<compile_context>
chip_gen: v7x
topology: tpu7x:2x2x1
jax: 0.10.0
libtpu: 0.0.40
codegen_flags: <defaults>
</compile_context>

<pallas_src>
import functools

import jax
import jax.numpy as jnp
from jax import lax
from jax.experimental import pallas as pl
from jax.experimental.pallas import tpu as pltpu


def _round_up(x: int, m: int) -> int:
    return ((x + m - 1) // m) * m


def _cdiv(a: int, b: int) -> int:
    return -(-a // b)


# --------------------------------------------------------------------------
# Kernels
# --------------------------------------------------------------------------

def _gelu_erf(h):
    # Exact erf-form GELU == PyTorch nn.GELU() default, kept in f32.
    # TODO(synk): if exact nn.GELU parity is not required, switch to
    # jax.nn.gelu(h, approximate=True): tanh routes through the EUP slot and
    # frees VALU slots on skinny-K shapes (matters most on v5e).
    return 0.5 * h * (1.0 + lax.erf(h * jnp.float32(0.7071067811865476)))


def _adapter_fused_kernel(x_ref, w1_ref, b1_ref, w2_ref, b2_ref, o_ref):
    # x : (TM, Din_p) f32        w1: (Din_p, Dout_p) bf16   b1: (1, Dout_p) f32
    # w2: (Dout_p, Dout_p) bf16  b2: (1, Dout_p) f32        o : (TM, Dout_p)
    x = x_ref[...].astype(jnp.bfloat16)                      # bf16 MXU input
    h = jnp.dot(x, w1_ref[...], preferred_element_type=jnp.float32)
    h = _gelu_erf(h + b1_ref[...])                           # f32 epilogue
    y = jnp.dot(h.astype(jnp.bfloat16), w2_ref[...],
                preferred_element_type=jnp.float32)
    o_ref[...] = (y + b2_ref[...]).astype(o_ref.dtype)


def _adapter_ntiled_kernel(x_ref, w1_ref, b1_ref, w2_ref, b2_ref, o_ref, h_ref):
    # Second grid axis tiles Dout for w2/b2/out.  The hidden activation is
    # computed once per row tile (j == 0) into a bf16 VMEM scratch and reused
    # across the Dout tiles.
    @pl.when(pl.program_id(1) == 0)
    def _():
        x = x_ref[...].astype(jnp.bfloat16)
        h = jnp.dot(x, w1_ref[...], preferred_element_type=jnp.float32)
        h_ref[...] = _gelu_erf(h + b1_ref[...]).astype(jnp.bfloat16)

    y = jnp.dot(h_ref[...], w2_ref[...], preferred_element_type=jnp.float32)
    o_ref[...] = (y + b2_ref[...]).astype(o_ref.dtype)


# --------------------------------------------------------------------------
# Tiling / VMEM budgeting
# --------------------------------------------------------------------------

def _select_tiling(M: int, Din_p: int, Dout_p: int):
    """Pick (TM, TN, vmem_limit_bytes) from a generation-aware VMEM budget."""
    # v5e/v6e: 128 MiB physical, v7x: 64 MiB per TensorCore.
    try:
        cap = int(pltpu.get_tpu_info().vmem_capacity_bytes)
    except Exception:
        cap = 64 * 2**20
    if cap <= 0:
        cap = 64 * 2**20
    budget = min(cap // 2, 48 * 2**20)        # ~32 MiB on v7x, 48 MiB on v5e/v6e

    # ---- N (output-feature) tiling: bound W2's VMEM footprint. ----
    w2_bytes = Dout_p * Dout_p * 2            # bf16, single-buffered resident
    w2_budget = int(0.35 * budget)
    if w2_bytes <= w2_budget:
        TN = Dout_p                           # fully resident -> fused kernel
        w2_vmem = w2_bytes + Dout_p * 4
    else:
        # Stream column tiles of W2 (double-buffered) over a second grid axis.
        tn = max(128, (w2_budget // (2 * Dout_p * 2)) // 128 * 128)
        tn = min(tn, Dout_p)
        while Dout_p % tn:                    # must evenly divide padded width
            tn -= 128
        TN = tn
        w2_vmem = 2 * (Dout_p * TN * 2 + TN * 4)

    # ---- M (row) tiling: fill the remaining budget. ----
    resident = Din_p * Dout_p * 2 + Dout_p * 4 + w2_vmem     # W1(bf16)+b1+W2 path
    per_row = (2 * Din_p * 4      # x tile, double-buffered, f32
               + 2 * TN * 4       # out tile, double-buffered, f32
               + Dout_p * 2       # bf16 hidden scratch / MXU input
               + Dout_p * 4)      # f32 hidden intermediate in the epilogue
    avail = max(budget - resident, 16 * per_row)
    tm_cap = min(1024, max(128, (avail // per_row) // 16 * 16))

    m16 = _round_up(max(M, 1), 16)            # 16-row granularity (bf16 packing)
    if m16 <= tm_cap:
        TM = m16
        if TM >= 512:
            # Split into >=2 row tiles so the "parallel" axis can span both
            # v7x TensorCores and the x/out DMAs have something to pipeline.
            TM = _round_up(_cdiv(m16, 2), 16)
    else:
        # Rebalance so M_pad does not overshoot (e.g. M=520 -> 2 x 272, not 1024).
        n_m = max(2, _cdiv(m16, tm_cap))
        TM = _round_up(_cdiv(m16, n_m), 128)
        while TM > tm_cap:
            n_m += 1
            TM = _round_up(_cdiv(m16, n_m), 128)

    footprint = resident + TM * per_row
    vmem_limit = int(min(cap * 3 // 4, max(footprint + footprint // 2, 24 * 2**20)))
    return TM, TN, vmem_limit


# --------------------------------------------------------------------------
# Forward wrapper
# --------------------------------------------------------------------------

@functools.partial(jax.jit,
                   static_argnames=("dout", "tile_override", "single_buffer_weights"))
def _image_adapter_forward_impl(vision_outputs, w1_p, b1_p, w2_p, b2_p, *,
                                dout, tile_override=None,
                                single_buffer_weights=True):
    B, S, Din = vision_outputs.shape
    Din_p, Dout_p = w1_p.shape
    M = B * S

    TM, TN, vmem_limit = _select_tiling(M, Din_p, Dout_p)
    if tile_override is not None:             # testing hook (small forced tiles)
        TM, TN = tile_override
    assert Dout_p % TN == 0

    M_pad = _round_up(_round_up(M, 16), TM)
    n_m, n_n = M_pad // TM, Dout_p // TN

    # Only x is padded per call (its row count is dynamic); weights were
    # padded / cast once in prepare_image_adapter_params.
    x2d = jnp.pad(vision_outputs.reshape(M, Din),
                  ((0, M_pad - M), (0, Din_p - Din)))

    cost = pl.CostEstimate(
        flops=2 * M_pad * (Din_p + Dout_p) * Dout_p,
        transcendentals=M_pad * Dout_p,
        bytes_accessed=(M_pad * Din_p * x2d.dtype.itemsize
                        + Din_p * Dout_p * 2 + Dout_p * Dout_p * 2
                        + 2 * Dout_p * 4
                        + M_pad * Dout_p * vision_outputs.dtype.itemsize),
    )

    def _const_spec(shape, index_map):
        # Constant-index residents: single-buffer when supported.
        if single_buffer_weights:
            return pl.BlockSpec(shape, index_map, pipeline_mode=pl.Buffered(1))
        return pl.BlockSpec(shape, index_map)

    if n_n == 1:
        # W2 fully resident: single-pass fused kernel, 1-D row grid.
        grid_spec = pltpu.PrefetchScalarGridSpec(
            num_scalar_prefetch=0,
            grid=(n_m,),
            in_specs=[
                pl.BlockSpec((TM, Din_p), lambda i: (i, 0)),
                _const_spec((Din_p, Dout_p), lambda i: (0, 0)),
                _const_spec((1, Dout_p), lambda i: (0, 0)),
                _const_spec((Dout_p, Dout_p), lambda i: (0, 0)),
                _const_spec((1, Dout_p), lambda i: (0, 0)),
            ],
            out_specs=pl.BlockSpec((TM, Dout_p), lambda i: (i, 0)),
        )
        kernel = _adapter_fused_kernel
        dim_sem = ("parallel",)
    else:
        # Large Dout: tile W2/b2/out over a second ("arbitrary") grid axis.
        grid_spec = pltpu.PrefetchScalarGridSpec(
            num_scalar_prefetch=0,
            grid=(n_m, n_n),
            in_specs=[
                pl.BlockSpec((TM, Din_p), lambda i, j: (i, 0)),
                _const_spec((Din_p, Dout_p), lambda i, j: (0, 0)),
                _const_spec((1, Dout_p), lambda i, j: (0, 0)),
                pl.BlockSpec((Dout_p, TN), lambda i, j: (0, j)),
                pl.BlockSpec((1, TN), lambda i, j: (0, j)),
            ],
            out_specs=pl.BlockSpec((TM, TN), lambda i, j: (i, j)),
            scratch_shapes=[pltpu.VMEM((TM, Dout_p), jnp.bfloat16)],
        )
        kernel = _adapter_ntiled_kernel
        dim_sem = ("parallel", "arbitrary")

    out2d = pl.pallas_call(
        kernel,
        out_shape=jax.ShapeDtypeStruct((M_pad, Dout_p), vision_outputs.dtype),
        grid_spec=grid_spec,
        compiler_params=pltpu.CompilerParams(
            dimension_semantics=dim_sem,
            vmem_limit_bytes=vmem_limit,
        ),
        cost_estimate=cost,
    )(x2d, w1_p, b1_p, w2_p, b2_p)

    return out2d[:M, :dout].reshape(B, S, dout)


def image_adapter_forward(vision_outputs, w1_p, b1_p, w2_p, b2_p, *, dout,
                          tile_override=None):
    """Fused Linear->GELU->Linear forward on padded/bf16 params (see prepare_*)."""
    try:
        return _image_adapter_forward_impl(
            vision_outputs, w1_p, b1_p, w2_p, b2_p, dout=dout,
            tile_override=tile_override, single_buffer_weights=True)
    except Exception:
        # Fallback for jax versions where BlockSpec(pipeline_mode=pl.Buffered(1))
        # is not supported by the TPU pallas_call pipeliner.
        return _image_adapter_forward_impl(
            vision_outputs, w1_p, b1_p, w2_p, b2_p, dout=dout,
            tile_override=tile_override, single_buffer_weights=False)


# --------------------------------------------------------------------------
# Parameter helpers
# --------------------------------------------------------------------------

def prepare_image_adapter_params(w1, b1, w2, b2):
    """One-time prep: pad feature dims to multiples of 128 (lane-dense, exact
    math since the padding is zeros) and cast the matmul weights to bf16.
    Biases stay f32 for the f32 epilogue."""
    din, dout = w1.shape
    din_p, dout_p = _round_up(din, 128), _round_up(dout, 128)
    w1_p = jnp.pad(w1, ((0, din_p - din), (0, dout_p - dout))).astype(jnp.bfloat16)
    w2_p = jnp.pad(w2, ((0, dout_p - dout), (0, dout_p - dout))).astype(jnp.bfloat16)
    b1_p = jnp.pad(b1.reshape(1, dout), ((0, 0), (0, dout_p - dout))).astype(jnp.float32)
    b2_p = jnp.pad(b2.reshape(1, dout), ((0, 0), (0, dout_p - dout))).astype(jnp.float32)
    return w1_p, b1_p, w2_p, b2_p


def init_image_adapter_params(key, input_features, output_features):
    """Synthetic params matching nn.Linear init.  PyTorch stores weight as
    (out, in); we keep (in, out) so the kernel does x @ W directly."""
    k1, k2, k3, k4 = jax.random.split(key, 4)
    lim1 = 1.0 / jnp.sqrt(input_features)
    lim2 = 1.0 / jnp.sqrt(output_features)
    w1 = jax.random.uniform(k1, (input_features, output_features),
                            jnp.float32, -lim1, lim1)
    b1 = jax.random.uniform(k2, (output_features,), jnp.float32, -lim1, lim1)
    w2 = jax.random.uniform(k3, (output_features, output_features),
                            jnp.float32, -lim2, lim2)
    b2 = jax.random.uniform(k4, (output_features,), jnp.float32, -lim2, lim2)
    return w1, b1, w2, b2


def _reference(x, w1, b1, w2, b2):
    h = x.reshape(-1, x.shape[-1]) @ w1 + b1
    h = 0.5 * h * (1.0 + lax.erf(h / jnp.sqrt(2.0)))       # nn.GELU() default
    return (h @ w2 + b2).reshape(*x.shape[:-1], w2.shape[-1])


if __name__ == "__main__":
    # Small shapes consistent with the module's forward: (batch, seq, features).
    B, S = 2, 8
    input_features, output_features = 32, 64

    key = jax.random.PRNGKey(0)
    k_x, k_p = jax.random.split(key)

    vision_outputs = jax.random.normal(k_x, (B, S, input_features), jnp.float32)
    w1, b1, w2, b2 = init_image_adapter_params(k_p, input_features, output_features)
    params = prepare_image_adapter_params(w1, b1, w2, b2)

    out = image_adapter_forward(vision_outputs, *params, dout=output_features)
    out = jax.block_until_ready(out)

    y_ref = _reference(vision_outputs, w1, b1, w2, b2)
    assert out.shape == y_ref.shape
    # bf16 MXU inputs with f32 accumulation + f32 epilogue: small drift allowed.
    assert jnp.allclose(out, y_ref, atol=3e-2, rtol=3e-2), \
        float(jnp.max(jnp.abs(out - y_ref)))

    # Also exercise the Dout-tiled (large-W2) path and a multi-step row grid at
    # small sizes by forcing the tile sizes: TM=16 (2 row tiles), TN=128 (2 Dout tiles).
    in2, out2 = 64, 256
    x2 = jax.random.normal(jax.random.PRNGKey(1), (2, 16, in2), jnp.float32)
    p2 = init_image_adapter_params(jax.random.PRNGKey(2), in2, out2)
    pp2 = prepare_image_adapter_params(*p2)
    got2 = jax.block_until_ready(
        image_adapter_forward(x2, *pp2, dout=out2, tile_override=(16, 128)))
    ref2 = _reference(x2, *p2)
    assert got2.shape == ref2.shape
    assert jnp.allclose(got2, ref2, atol=3e-2, rtol=3e-2), \
        float(jnp.max(jnp.abs(got2 - ref2)))

    print("KERNEL_OK")
</pallas_src>

<mosaic_0001>
module attributes {stable_mosaic.version = 11 : i64} {
  func.func @_adapter_fused_kernel(%arg0: i32, %arg1: memref<16x128xf32, #tpu.memory_space<vmem>>, %arg2: memref<128x128xbf16, #tpu.memory_space<vmem>>, %arg3: memref<1x128xf32, #tpu.memory_space<vmem>>, %arg4: memref<128x128xbf16, #tpu.memory_space<vmem>>, %arg5: memref<1x128xf32, #tpu.memory_space<vmem>>, %arg6: memref<16x128xf32, #tpu.memory_space<vmem>>) attributes {dimension_semantics = [#tpu.dimension_semantics<parallel>], iteration_bounds = array<i64: 1>, scalar_prefetch = 0 : i64, scratch_operands = 0 : i64, tpu.core_type = #tpu.core_type<tc>, window_params = [{transform_indices = @transform_0, window_bounds = array<i64: 16, 128>}, {pipeline_mode = #tpu.pipeline_mode<synchronous>, transform_indices = @transform_1, window_bounds = array<i64: 128, 128>}, {pipeline_mode = #tpu.pipeline_mode<synchronous>, transform_indices = @transform_2, window_bounds = array<i64: 1, 128>}, {pipeline_mode = #tpu.pipeline_mode<synchronous>, transform_indices = @transform_3, window_bounds = array<i64: 128, 128>}, {pipeline_mode = #tpu.pipeline_mode<synchronous>, transform_indices = @transform_4, window_bounds = array<i64: 1, 128>}, {transform_indices = @transform_5, window_bounds = array<i64: 16, 128>}]} {
    %c0 = arith.constant 0 : index
    %c0_0 = arith.constant 0 : index
    %0 = vector.load %arg1[%c0, %c0_0] : memref<16x128xf32, #tpu.memory_space<vmem>>, vector<16x128xf32>
    %1 = arith.truncf %0 : vector<16x128xf32> to vector<16x128xbf16>
    %c0_1 = arith.constant 0 : index
    %c0_2 = arith.constant 0 : index
    %2 = vector.load %arg2[%c0_1, %c0_2] : memref<128x128xbf16, #tpu.memory_space<vmem>>, vector<128x128xbf16>
    %cst = arith.constant dense<0.000000e+00> : vector<16x128xf32>
    %3 = tpu.matmul %1, %2, %cst {dimension_numbers = #tpu.dot_dimension_numbers<[1], [0], [0], [1], [0, 0, 1, 1], [], []>} : vector<16x128xbf16>, vector<128x128xbf16>, vector<16x128xf32> -> vector<16x128xf32>
    %c0_3 = arith.constant 0 : index
    %c0_4 = arith.constant 0 : index
    %4 = vector.load %arg3[%c0_3, %c0_4] : memref<1x128xf32, #tpu.memory_space<vmem>>, vector<1x128xf32>
    %5 = vector.broadcast %4 : vector<1x128xf32> to vector<16x128xf32>
    %6 = arith.addf %3, %5 : vector<16x128xf32>
    %cst_5 = arith.constant 5.000000e-01 : f32
    %7 = vector.broadcast %cst_5 : f32 to vector<16x128xf32>
    %8 = arith.mulf %7, %6 : vector<16x128xf32>
    %cst_6 = arith.constant 0.707106769 : f32
    %9 = vector.broadcast %cst_6 : f32 to vector<16x128xf32>
    %10 = arith.mulf %6, %9 : vector<16x128xf32>
    %11 = math.erf %10 : vector<16x128xf32>
    %cst_7 = arith.constant 1.000000e+00 : f32
    %12 = vector.broadcast %cst_7 : f32 to vector<16x128xf32>
    %13 = arith.addf %12, %11 : vector<16x128xf32>
    %14 = arith.mulf %8, %13 : vector<16x128xf32>
    %15 = arith.truncf %14 : vector<16x128xf32> to vector<16x128xbf16>
    %c0_8 = arith.constant 0 : index
    %c0_9 = arith.constant 0 : index
    %16 = vector.load %arg4[%c0_8, %c0_9] : memref<128x128xbf16, #tpu.memory_space<vmem>>, vector<128x128xbf16>
    %cst_10 = arith.constant dense<0.000000e+00> : vector<16x128xf32>
    %17 = tpu.matmul %15, %16, %cst_10 {dimension_numbers = #tpu.dot_dimension_numbers<[1], [0], [0], [1], [0, 0, 1, 1], [], []>} : vector<16x128xbf16>, vector<128x128xbf16>, vector<16x128xf32> -> vector<16x128xf32>
    %c0_11 = arith.constant 0 : index
    %c0_12 = arith.constant 0 : index
    %18 = vector.load %arg5[%c0_11, %c0_12] : memref<1x128xf32, #tpu.memory_space<vmem>>, vector<1x128xf32>
    %19 = vector.broadcast %18 : vector<1x128xf32> to vector<16x128xf32>
    %20 = arith.addf %17, %19 : vector<16x128xf32>
    %c0_13 = arith.constant 0 : index
    %c0_14 = arith.constant 0 : index
    %21 = vector.load %arg6[%c0_13, %c0_14] : memref<16x128xf32, #tpu.memory_space<vmem>>, vector<16x128xf32>
    tpu.vector_store %arg6[%c0_13, %c0_14], %20 {strides = array<i32>} : memref<16x128xf32, #tpu.memory_space<vmem>>, vector<16x128xf32>,
    return
  }
  func.func @transform_0(%arg0: i32) -> (i32, i32) {
    %c0_i32 = arith.constant 0 : i32
    %c0_i32_0 = arith.constant 0 : i32
    return %arg0, %c0_i32 : i32, i32
  }
  func.func @transform_1(%arg0: i32) -> (i32, i32) {
    %c0_i32 = arith.constant 0 : i32
    %c0_i32_0 = arith.constant 0 : i32
    %c0_i32_1 = arith.constant 0 : i32
    return %c0_i32, %c0_i32_0 : i32, i32
  }
  func.func @transform_2(%arg0: i32) -> (i32, i32) {
    %c0_i32 = arith.constant 0 : i32
    %c0_i32_0 = arith.constant 0 : i32
    %c0_i32_1 = arith.constant 0 : i32
    return %c0_i32, %c0_i32_0 : i32, i32
  }
  func.func @transform_3(%arg0: i32) -> (i32, i32) {
    %c0_i32 = arith.constant 0 : i32
    %c0_i32_0 = arith.constant 0 : i32
    %c0_i32_1 = arith.constant 0 : i32
    return %c0_i32, %c0_i32_0 : i32, i32
  }
  func.func @transform_4(%arg0: i32) -> (i32, i32) {
    %c0_i32 = arith.constant 0 : i32
    %c0_i32_0 = arith.constant 0 : i32
    %c0_i32_1 = arith.constant 0 : i32
    return %c0_i32, %c0_i32_0 : i32, i32
  }
  func.func @transform_5(%arg0: i32) -> (i32, i32) {
    %c0_i32 = arith.constant 0 : i32
    %c0_i32_0 = arith.constant 0 : i32
    return %arg0, %c0_i32 : i32, i32
  }
}

module attributes {stable_mosaic.version = 11 : i64} {
  func.func @_adapter_fused_kernel(%arg0: i32, %arg1: memref<16x128xf32, #tpu.memory_space<vmem>>, %arg2: memref<128x128xbf16, #tpu.memory_space<vmem>>, %arg3: memref<1x128xf32, #tpu.memory_space<vmem>>, %arg4: memref<128x128xbf16, #tpu.memory_space<vmem>>, %arg5: memref<1x128xf32, #tpu.memory_space<vmem>>, %arg6: memref<16x128xf32, #tpu.memory_space<vmem>>) attributes {dimension_semantics = [#tpu.dimension_semantics<parallel>], iteration_bounds = array<i64: 1>, scalar_prefetch = 0 : i64, scratch_operands = 0 : i64, tpu.core_type = #tpu.core_type<tc>, window_params = [{transform_indices = @transform_0, window_bounds = array<i64: 16, 128>}, {pipeline_mode = #tpu.pipeline_mode<synchronous>, transform_indices = @transform_1, window_bounds = array<i64: 128, 128>}, {pipeline_mode = #tpu.pipeline_mode<synchronous>, transform_indices = @transform_2, window_bounds = array<i64: 1, 128>}, {pipeline_mode = #tpu.pipeline_mode<synchronous>, transform_indices = @transform_3, window_bounds = array<i64: 128, 128>}, {pipeline_mode = #tpu.pipeline_mode<synchronous>, transform_indices = @transform_4, window_bounds = array<i64: 1, 128>}, {transform_indices = @transform_5, window_bounds = array<i64: 16, 128>}]} {
    %c0 = arith.constant 0 : index
    %c0_0 = arith.constant 0 : index
    %0 = vector.load %arg1[%c0, %c0_0] : memref<16x128xf32, #tpu.memory_space<vmem>>, vector<16x128xf32>
    %1 = arith.truncf %0 : vector<16x128xf32> to vector<16x128xbf16>
    %c0_1 = arith.constant 0 : index
    %c0_2 = arith.constant 0 : index
    %2 = vector.load %arg2[%c0_1, %c0_2] : memref<128x128xbf16, #tpu.memory_space<vmem>>, vector<128x128xbf16>
    %cst = arith.constant dense<0.000000e+00> : vector<16x128xf32>
    %3 = tpu.matmul %1, %2, %cst {dimension_numbers = #tpu.dot_dimension_numbers<[1], [0], [0], [1], [0, 0, 1, 1], [], []>} : vector<16x128xbf16>, vector<128x128xbf16>, vector<16x128xf32> -> vector<16x128xf32>
    %c0_3 = arith.constant 0 : index
    %c0_4 = arith.constant 0 : index
    %4 = vector.load %arg3[%c0_3, %c0_4] : memref<1x128xf32, #tpu.memory_space<vmem>>, vector<1x128xf32>
    %5 = vector.broadcast %4 : vector<1x128xf32> to vector<16x128xf32>
    %6 = arith.addf %3, %5 : vector<16x128xf32>
    %cst_5 = arith.constant 5.000000e-01 : f32
    %7 = vector.broadcast %cst_5 : f32 to vector<16x128xf32>
    %8 = arith.mulf %7, %6 : vector<16x128xf32>
    %cst_6 = arith.constant 0.707106769 : f32
    %9 = vector.broadcast %cst_6 : f32 to vector<16x128xf32>
    %10 = arith.mulf %6, %9 : vector<16x128xf32>
    %11 = math.erf %10 : vector<16x128xf32>
    %cst_7 = arith.constant 1.000000e+00 : f32
    %12 = vector.broadcast %cst_7 : f32 to vector<16x128xf32>
    %13 = arith.addf %12, %11 : vector<16x128xf32>
    %14 = arith.mulf %8, %13 : vector<16x128xf32>
    %15 = arith.truncf %14 : vector<16x128xf32> to vector<16x128xbf16>
    %c0_8 = arith.constant 0 : index
    %c0_9 = arith.constant 0 : index
    %16 = vector.load %arg4[%c0_8, %c0_9] : memref<128x128xbf16, #tpu.memory_space<vmem>>, vector<128x128xbf16>
    %cst_10 = arith.constant dense<0.000000e+00> : vector<16x128xf32>
    %17 = tpu.matmul %15, %16, %cst_10 {dimension_numbers = #tpu.dot_dimension_numbers<[1], [0], [0], [1], [0, 0, 1, 1], [], []>} : vector<16x128xbf16>, vector<128x128xbf16>, vector<16x128xf32> -> vector<16x128xf32>
    %c0_11 = arith.constant 0 : index
    %c0_12 = arith.constant 0 : index
    %18 = vector.load %arg5[%c0_11, %c0_12] : memref<1x128xf32, #tpu.memory_space<vmem>>, vector<1x128xf32>
    %19 = vector.broadcast %18 : vector<1x128xf32> to vector<16x128xf32>
    %20 = arith.addf %17, %19 : vector<16x128xf32>
    %c0_13 = arith.constant 0 : index
    %c0_14 = arith.constant 0 : index
    %21 = vector.load %arg6[%c0_13, %c0_14] : memref<16x128xf32, #tpu.memory_space<vmem>>, vector<16x128xf32>
    tpu.vector_store %arg6[%c0_13, %c0_14], %20 {strides = array<i32>} : memref<16x128xf32, #tpu.memory_space<vmem>>, vector<16x128xf32>,
    return
  }
  func.func @transform_0(%arg0: i32) -> (i32, i32) {
    %c0_i32 = arith.constant 0 : i32
    %c0_i32_0 = arith.constant 0 : i32
    return %arg0, %c0_i32 : i32, i32
  }
  func.func @transform_1(%arg0: i32) -> (i32, i32) {
    %c0_i32 = arith.constant 0 : i32
    %c0_i32_0 = arith.constant 0 : i32
    %c0_i32_1 = arith.constant 0 : i32
    return %c0_i32, %c0_i32_0 : i32, i32
  }
  func.func @transform_2(%arg0: i32) -> (i32, i32) {
    %c0_i32 = arith.constant 0 : i32
    %c0_i32_0 = arith.constant 0 : i32
    %c0_i32_1 = arith.constant 0 : i32
    return %c0_i32, %c0_i32_0 : i32, i32
  }
  func.func @transform_3(%arg0: i32) -> (i32, i32) {
    %c0_i32 = arith.constant 0 : i32
    %c0_i32_0 = arith.constant 0 : i32
    %c0_i32_1 = arith.constant 0 : i32
    return %c0_i32, %c0_i32_0 : i32, i32
  }
  func.func @transform_4(%arg0: i32) -> (i32, i32) {
    %c0_i32 = arith.constant 0 : i32
    %c0_i32_0 = arith.constant 0 : i32
    %c0_i32_1 = arith.constant 0 : i32
    return %c0_i32, %c0_i32_0 : i32, i32
  }
  func.func @transform_5(%arg0: i32) -> (i32, i32) {
    %c0_i32 = arith.constant 0 : i32
    %c0_i32_0 = arith.constant 0 : i32
    return %arg0, %c0_i32 : i32, i32
  }
}

</mosaic_0001>

<bundles_post_ra>
// kernel: _image_adapter_forward_impl.1
= control target key start
LH: loop header
LB: loop body
LE: loop exit
PB: predicated region body
PF: predicated region fallthrough
CT: control target
= control target key end

     0   :  { %10 = vsyncpa [#allocation3], 0  ;;  %s523_s0 = inlined_call_operand.vmem [shape: f32[16,128], index: 0, kind: input, shape index: {}]   ;;  %s524_s1 = inlined_call_operand.hbm [shape: bf16[128,128], index: 1, kind: input, shape index: {}]   ;;  %s525_s2 = inlined_call_operand.vmem [shape: f32[1,128], index: 2, kind: input, shape index: {}]   ;;  %s526_s3 = inlined_call_operand.hbm [shape: bf16[128,128], index: 3, kind: input, shape index: {}]   ;;  %s527_s4 = inlined_call_operand.vmem [shape: f32[1,128], index: 4, kind: input, shape index: {}]   ;;  %s528_s5 = inlined_call_operand.vmem [shape: f32[16,128], index: 5, kind: output, shape index: {}]  }
   0x1   :  { %11 = vsyncpa [#allocation5], 0  ;;  %s445_s18 = smov [#allocation2]   ;;  %s397_s22 = scalar_lea.hbm %s524_s1, 1024 }
   0x2   :  { %s19_s19 = sshll.u32 %s445_s18, 4  ;;  %p398_p0 = scmp.ne.s32.totalorder %s524_s1, %s397_s22  ;;  %s20_s19 = int_to_ptr.vmem [resolvable:$true] %s19_s19 }
   0x3   :  { %p401_p1 = scmp.lt.u32.totalorder %s397_s22, %s524_s1 }
   0x5   :  { %p403_p2 = pnand %p401_p1, %p398_p0 }
   0x7   :  { %406 = shalt.err (!%p403_p2)
}
   0x8   :  { %s407_s27 = scalar_lea.vmem %s20_s19, 1024  ;;  %p412_p4 = scmp.lt.s32.totalorder %s20_s19, %s20_s19 }
   0x9   :  { %p408_p3 = scmp.ne.s32.totalorder %s20_s19, %s407_s27  ;;  %p413_p5 = scmp.lt.s32.totalorder %s407_s27, %s407_s27 }
   0xb   :  { %p414_p6 = por %p413_p5, %p412_p4 }
   0xd   :  { %p415_p7 = pnand %p414_p6, %p408_p3 }
   0xf   :  { %418 = shalt.err (!%p415_p7)
}
  0x10   :  { %s446_s28 = smov 64   ;;  %s447_s29 = smov 4  }
  0x11   :  { %25 = dma.hbm_to_vmem [thread:$0]  %s524_s1, 1024, %s20_s19, [#allocation3], %s446_s28, %s446_s28, %s447_s29  }
  0x12   :  { %s448_s7 = smov [#allocation4]   ;;  %s419_s11 = scalar_lea.hbm %s526_s3, 1024 }
  0x13   :  { %s33_s8 = sshll.u32 %s448_s7, 4  ;;  %p420_p8 = scmp.ne.s32.totalorder %s526_s3, %s419_s11  ;;  %s34_s8 = int_to_ptr.vmem [resolvable:$true] %s33_s8 }
  0x14   :  { %p423_p9 = scmp.lt.u32.totalorder %s419_s11, %s526_s3 }
  0x16   :  { %p425_p10 = pnand %p423_p9, %p420_p8 }
  0x18   :  { %428 = shalt.err (!%p425_p10)
}
  0x19   :  { %s429_s16 = scalar_lea.vmem %s34_s8, 1024  ;;  %p434_p12 = scmp.lt.s32.totalorder %s34_s8, %s34_s8 }
  0x1a   :  { %p430_p11 = scmp.ne.s32.totalorder %s34_s8, %s429_s16  ;;  %p435_p13 = scmp.lt.s32.totalorder %s429_s16, %s429_s16 }
  0x1c   :  { %p436_p0 = por %p435_p13, %p434_p12 }
  0x1e   :  { %p437_p1 = pnand %p436_p0, %p430_p11 }
  0x20   :  { %440 = shalt.err (!%p437_p1)
}
  0x21   :  { %39 = dma.hbm_to_vmem [thread:$0]  %s526_s3, 1024, %s34_s8, [#allocation5], %s446_s28, %s446_s28, %s447_s29  }
  0x22   :  { %441 = dma.done.wait [#allocation3], 1024  }
  0x23   :  { %442 = vsyncadd [#allocation3], 4294966272 }
  0x24   :  { %443 = dma.done.wait [#allocation5], 1024  }
  0x25   :  { %444 = vsyncadd [#allocation5], 4294966272  ;;  %v449_v0 = vmov 0.0   ;;  %vm450_vm0 = vmmov 0   ;;  %v377_v1 = vld [vmem:[#allocation2] sm:$0xff]   ;;  %v378_v2 = vld [vmem:[#allocation2 + $0x8] sm:$0xff]  }
  0x26   :  { %331 = vmatprep.subr.bf16.mxu0 %v449_v0  ;;  %347 = vmatprep.mubr.msk.bf16.mxu0 %vm450_vm0, %v449_v0  ;;  %v379_v3 = vld [vmem:[#allocation2 + $0x10] sm:$0xff]   ;;  %v385_v4 = vld [vmem:[#allocation4] sm:$0xff]   ;;  %v380_v5 = vld [vmem:[#allocation2 + $0x18] sm:$0xff]  }
  0x27   :  { %351 = vmatprep.subr.bf16.mxu1 %v449_v0  ;;  %367 = vmatprep.mubr.msk.bf16.mxu1 %vm450_vm0, %v449_v0  ;;  %v386_v6 = vld [vmem:[#allocation4 + $0x8] sm:$0xff]   ;;  %v381_v7 = vld [vmem:[#allocation2 + $0x20] sm:$0xff]   ;;  %v383_v9 = vld [vmem:[#allocation2 + $0x30] sm:$0xff]  }
  0x28   :  { %332 = vmatpush3.bf16.msra.mxu0 %v377_v1  ;;  %352 = vmatpush3.bf16.msra.mxu1 %v385_v4  ;;  %v382_v8 = vld [vmem:[#allocation2 + $0x28] sm:$0xff]   ;;  %v384_v10 = vld [vmem:[#allocation2 + $0x38] sm:$0xff]   ;;  %v49_v11 = vld [vmem:[%s523_s0] sm:$0xff] }
  0x29   :  { %333 = vmatprep.subr.bf16.mxu0 %v449_v0  ;;  %353 = vmatprep.subr.bf16.mxu1 %v449_v0  ;;  %v50_v12 = vld [vmem:[%s523_s0 + $0x8] sm:$0xff]  ;;  %v387_v14 = vld [vmem:[#allocation4 + $0x10] sm:$0xff]   ;;  %v388_v15 = vld [vmem:[#allocation4 + $0x18] sm:$0xff]  }
  0x2a   :  { %v51_v13 = vpack.c.bf16 %v50_v12, %v49_v11  ;;  %v389_v16 = vld [vmem:[#allocation4 + $0x20] sm:$0xff]   ;;  %v390_v17 = vld [vmem:[#allocation4 + $0x28] sm:$0xff]   ;;  %v391_v18 = vld [vmem:[#allocation4 + $0x30] sm:$0xff]  }
  0x2b   :  { %v392_v19 = vld [vmem:[#allocation4 + $0x38] sm:$0xff]   ;;  %v295_v20 = vld [vmem:[%s525_s2] ss:$0 sm:$0xff] }
  0x2c   :  { %334 = vmatpush3.bf16.msra.mxu0 %v378_v2  ;;  %354 = vmatpush3.bf16.msra.mxu1 %v386_v6  ;;  %v304_v38 = vld [vmem:[%s527_s4] ss:$0 sm:$0xff] }
  0x2d   :  { %335 = vmatprep.subr.bf16.mxu0 %v449_v0  ;;  %355 = vmatprep.subr.bf16.mxu1 %v449_v0 }
  0x30   :  { %336 = vmatpush3.bf16.msra.mxu0 %v379_v3  ;;  %356 = vmatpush3.bf16.msra.mxu1 %v387_v14 }
  0x31   :  { %337 = vmatprep.subr.bf16.mxu0 %v449_v0  ;;  %357 = vmatprep.subr.bf16.mxu1 %v449_v0 }
  0x34   :  { %338 = vmatpush3.bf16.msra.mxu0 %v380_v5  ;;  %358 = vmatpush3.bf16.msra.mxu1 %v388_v15 }
  0x35   :  { %339 = vmatprep.subr.bf16.mxu0 %v449_v0  ;;  %359 = vmatprep.subr.bf16.mxu1 %v449_v0 }
  0x38   :  { %340 = vmatpush3.bf16.msra.mxu0 %v381_v7  ;;  %360 = vmatpush3.bf16.msra.mxu1 %v389_v16 }
  0x39   :  { %341 = vmatprep.subr.bf16.mxu0 %v449_v0  ;;  %361 = vmatprep.subr.bf16.mxu1 %v449_v0 }
  0x3c   :  { %342 = vmatpush3.bf16.msra.mxu0 %v382_v8  ;;  %362 = vmatpush3.bf16.msra.mxu1 %v390_v17 }
  0x3d   :  { %343 = vmatprep.subr.bf16.mxu0 %v449_v0  ;;  %363 = vmatprep.subr.bf16.mxu1 %v449_v0 }
  0x40   :  { %344 = vmatpush3.bf16.msra.mxu0 %v383_v9  ;;  %364 = vmatpush3.bf16.msra.mxu1 %v391_v18 }
  0x41   :  { %345 = vmatprep.subr.bf16.mxu0 %v449_v0  ;;  %365 = vmatprep.subr.bf16.mxu1 %v449_v0 }
  0x44   :  { %346 = vmatpush3.bf16.msra.mxu0 %v384_v10  ;;  %366 = vmatpush3.bf16.msra.mxu1 %v392_v19 }
  0x47   :  { %348 = vmatmul.mubr.bf16.vlgmr.msra.gmra.mrb[0].mxu0 %v51_v13 }
 0x11a   :  { %v157_v21 = vpop.f32.mrb[0].mxu0 }
 0x11b   :  { %v158_v22 = vadd.f32 %v295_v20, %v157_v21  ;;  %v349_v23 = vpop.f32.mrb[1].mxu0 }
 0x11c   :  { %v160_v24 = vpop.f32.mrb[2].mxu0 }
 0x11d   :  { %v166_v25 = vmul.f32 0.70710677, %v158_v22  ;;  %v161_v26 = vadd.f32 %v295_v20, %v160_v24  ;;  %v350_v27 = vpop.f32.mrb[3].mxu0  ;;  %v164_v32 = vmul.f32 0.5, %v158_v22 }
 0x11f   :  { %393 = verf.f32 %v166_v25  ;;  %v167_v28 = vmul.f32 0.70710677, %v161_v26  ;;  %v165_v33 = vmul.f32 0.5, %v161_v26 }
 0x121   :  { %395 = verf.f32 %v167_v28 }
 0x129   :  { %v394_v29 = vpop.eup %393 }
 0x12a   :  { %v170_v30 = vadd.f32 1.0, %v394_v29 }
 0x12b   :  { %v396_v31 = vpop.eup %395 }
 0x12c   :  { %v171_v34 = vadd.f32 1.0, %v396_v31  ;;  %v172_v35 = vmul.f32 %v170_v30, %v164_v32 }
 0x12e   :  { %v173_v36 = vmul.f32 %v171_v34, %v165_v33 }
 0x130   :  { %v174_v37 = vpack.c.bf16 %v173_v36, %v172_v35 }
 0x132   :  { %368 = vmatmul.mubr.bf16.vlgmr.msra.gmra.mrb[0].mxu1 %v174_v37 }
 0x205   :  { %v280_v39 = vpop.f32.mrb[0].mxu1 }
 0x206   :  { %v281_v40 = vadd.f32 %v304_v38, %v280_v39  ;;  %v369_v41 = vpop.f32.mrb[1].mxu1 }
 0x207   :  { %v283_v42 = vpop.f32.mrb[2].mxu1 }
 0x208   :  { %287 = vst [vmem:[%s528_s5] sm:$0xff] %v281_v40  ;;  %v284_v43 = vadd.f32 %v304_v38, %v283_v42  ;;  %v370_v44 = vpop.f32.mrb[3].mxu1 }
 0x20a   :  { %288 = vst [vmem:[%s528_s5 + $0x8] sm:$0xff] %v284_v43 }
 0x20b   :  { %293 = vsyncpa [#allocation3], 1 }
 0x20c   :  { %294 = vsyncpa [#allocation5], 1 }

// kernel: _image_adapter_forward_impl.1
= control target key start
LH: loop header
LB: loop body
LE: loop exit
PB: predicated region body
PF: predicated region fallthrough
CT: control target
= control target key end

     0   :  { %10 = vsyncpa [#allocation3], 0  ;;  %s523_s0 = inlined_call_operand.vmem [shape: f32[16,128], index: 0, kind: input, shape index: {}]   ;;  %s524_s1 = inlined_call_operand.hbm [shape: bf16[128,128], index: 1, kind: input, shape index: {}]   ;;  %s525_s2 = inlined_call_operand.vmem [shape: f32[1,128], index: 2, kind: input, shape index: {}]   ;;  %s526_s3 = inlined_call_operand.hbm [shape: bf16[128,128], index: 3, kind: input, shape index: {}]   ;;  %s527_s4 = inlined_call_operand.vmem [shape: f32[1,128], index: 4, kind: input, shape index: {}]   ;;  %s528_s5 = inlined_call_operand.vmem [shape: f32[16,128], index: 5, kind: output, shape index: {}]  }
   0x1   :  { %11 = vsyncpa [#allocation5], 0  ;;  %s445_s18 = smov [#allocation2]   ;;  %s397_s22 = scalar_lea.hbm %s524_s1, 1024 }
   0x2   :  { %s19_s19 = sshll.u32 %s445_s18, 4  ;;  %p398_p0 = scmp.ne.s32.totalorder %s524_s1, %s397_s22  ;;  %s20_s19 = int_to_ptr.vmem [resolvable:$true] %s19_s19 }
   0x3   :  { %p401_p1 = scmp.lt.u32.totalorder %s397_s22, %s524_s1 }
   0x5   :  { %p403_p2 = pnand %p401_p1, %p398_p0 }
   0x7   :  { %406 = shalt.err (!%p403_p2)
}
   0x8   :  { %s407_s27 = scalar_lea.vmem %s20_s19, 1024  ;;  %p412_p4 = scmp.lt.s32.totalorder %s20_s19, %s20_s19 }
   0x9   :  { %p408_p3 = scmp.ne.s32.totalorder %s20_s19, %s407_s27  ;;  %p413_p5 = scmp.lt.s32.totalorder %s407_s27, %s407_s27 }
   0xb   :  { %p414_p6 = por %p413_p5, %p412_p4 }
   0xd   :  { %p415_p7 = pnand %p414_p6, %p408_p3 }
   0xf   :  { %418 = shalt.err (!%p415_p7)
}
  0x10   :  { %s446_s28 = smov 64   ;;  %s447_s29 = smov 4  }
  0x11   :  { %25 = dma.hbm_to_vmem [thread:$0]  %s524_s1, 1024, %s20_s19, [#allocation3], %s446_s28, %s446_s28, %s447_s29  }
  0x12   :  { %s448_s7 = smov [#allocation4]   ;;  %s419_s11 = scalar_lea.hbm %s526_s3, 1024 }
  0x13   :  { %s33_s8 = sshll.u32 %s448_s7, 4  ;;  %p420_p8 = scmp.ne.s32.totalorder %s526_s3, %s419_s11  ;;  %s34_s8 = int_to_ptr.vmem [resolvable:$true] %s33_s8 }
  0x14   :  { %p423_p9 = scmp.lt.u32.totalorder %s419_s11, %s526_s3 }
  0x16   :  { %p425_p10 = pnand %p423_p9, %p420_p8 }
  0x18   :  { %428 = shalt.err (!%p425_p10)
}
  0x19   :  { %s429_s16 = scalar_lea.vmem %s34_s8, 1024  ;;  %p434_p12 = scmp.lt.s32.totalorder %s34_s8, %s34_s8 }
  0x1a   :  { %p430_p11 = scmp.ne.s32.totalorder %s34_s8, %s429_s16  ;;  %p435_p13 = scmp.lt.s32.totalorder %s429_s16, %s429_s16 }
  0x1c   :  { %p436_p0 = por %p435_p13, %p434_p12 }
  0x1e   :  { %p437_p1 = pnand %p436_p0, %p430_p11 }
  0x20   :  { %440 = shalt.err (!%p437_p1)
}
  0x21   :  { %39 = dma.hbm_to_vmem [thread:$0]  %s526_s3, 1024, %s34_s8, [#allocation5], %s446_s28, %s446_s28, %s447_s29  }
  0x22   :  { %441 = dma.done.wait [#allocation3], 1024  }
  0x23   :  { %442 = vsyncadd [#allocation3], 4294966272 }
  0x24   :  { %443 = dma.done.wait [#allocation5], 1024  }
  0x25   :  { %444 = vsyncadd [#allocation5], 4294966272  ;;  %v449_v0 = vmov 0.0   ;;  %vm450_vm0 = vmmov 0   ;;  %v377_v1 = vld [vmem:[#allocation2] sm:$0xff]   ;;  %v378_v2 = vld [vmem:[#allocation2 + $0x8] sm:$0xff]  }
  0x26   :  { %331 = vmatprep.subr.bf16.mxu0 %v449_v0  ;;  %347 = vmatprep.mubr.msk.bf16.mxu0 %vm450_vm0, %v449_v0  ;;  %v379_v3 = vld [vmem:[#allocation2 + $0x10] sm:$0xff]   ;;  %v385_v4 = vld [vmem:[#allocation4] sm:$0xff]   ;;  %v380_v5 = vld [vmem:[#allocation2 + $0x18] sm:$0xff]  }
  0x27   :  { %351 = vmatprep.subr.bf16.mxu1 %v449_v0  ;;  %367 = vmatprep.mubr.msk.bf16.mxu1 %vm450_vm0, %v449_v0  ;;  %v386_v6 = vld [vmem:[#allocation4 + $0x8] sm:$0xff]   ;;  %v381_v7 = vld [vmem:[#allocation2 + $0x20] sm:$0xff]   ;;  %v383_v9 = vld [vmem:[#allocation2 + $0x30] sm:$0xff]  }
  0x28   :  { %332 = vmatpush3.bf16.msra.mxu0 %v377_v1  ;;  %352 = vmatpush3.bf16.msra.mxu1 %v385_v4  ;;  %v382_v8 = vld [vmem:[#allocation2 + $0x28] sm:$0xff]   ;;  %v384_v10 = vld [vmem:[#allocation2 + $0x38] sm:$0xff]   ;;  %v49_v11 = vld [vmem:[%s523_s0] sm:$0xff] }
  0x29   :  { %333 = vmatprep.subr.bf16.mxu0 %v449_v0  ;;  %353 = vmatprep.subr.bf16.mxu1 %v449_v0  ;;  %v50_v12 = vld [vmem:[%s523_s0 + $0x8] sm:$0xff]  ;;  %v387_v14 = vld [vmem:[#allocation4 + $0x10] sm:$0xff]   ;;  %v388_v15 = vld [vmem:[#allocation4 + $0x18] sm:$0xff]  }
  0x2a   :  { %v51_v13 = vpack.c.bf16 %v50_v12, %v49_v11  ;;  %v389_v16 = vld [vmem:[#allocation4 + $0x20] sm:$0xff]   ;;  %v390_v17 = vld [vmem:[#allocation4 + $0x28] sm:$0xff]   ;;  %v391_v18 = vld [vmem:[#allocation4 + $0x30] sm:$0xff]  }
  0x2b   :  { %v392_v19 = vld [vmem:[#allocation4 + $0x38] sm:$0xff]   ;;  %v295_v20 = vld [vmem:[%s525_s2] ss:$0 sm:$0xff] }
  0x2c   :  { %334 = vmatpush3.bf16.msra.mxu0 %v378_v2  ;;  %354 = vmatpush3.bf16.msra.mxu1 %v386_v6  ;;  %v304_v38 = vld [vmem:[%s527_s4] ss:$0 sm:$0xff] }
  0x2d   :  { %335 = vmatprep.subr.bf16.mxu0 %v449_v0  ;;  %355 = vmatprep.subr.bf16.mxu1 %v449_v0 }
  0x30   :  { %336 = vmatpush3.bf16.msra.mxu0 %v379_v3  ;;  %356 = vmatpush3.bf16.msra.mxu1 %v387_v14 }
  0x31   :  { %337 = vmatprep.subr.bf16.mxu0 %v449_v0  ;;  %357 = vmatprep.subr.bf16.mxu1 %v449_v0 }
  0x34   :  { %338 = vmatpush3.bf16.msra.mxu0 %v380_v5  ;;  %358 = vmatpush3.bf16.msra.mxu1 %v388_v15 }
  0x35   :  { %339 = vmatprep.subr.bf16.mxu0 %v449_v0  ;;  %359 = vmatprep.subr.bf16.mxu1 %v449_v0 }
  0x38   :  { %340 = vmatpush3.bf16.msra.mxu0 %v381_v7  ;;  %360 = vmatpush3.bf16.msra.mxu1 %v389_v16 }
  0x39   :  { %341 = vmatprep.subr.bf16.mxu0 %v449_v0  ;;  %361 = vmatprep.subr.bf16.mxu1 %v449_v0 }
  0x3c   :  { %342 = vmatpush3.bf16.msra.mxu0 %v382_v8  ;;  %362 = vmatpush3.bf16.msra.mxu1 %v390_v17 }
  0x3d   :  { %343 = vmatprep.subr.bf16.mxu0 %v449_v0  ;;  %363 = vmatprep.subr.bf16.mxu1 %v449_v0 }
  0x40   :  { %344 = vmatpush3.bf16.msra.mxu0 %v383_v9  ;;  %364 = vmatpush3.bf16.msra.mxu1 %v391_v18 }
  0x41   :  { %345 = vmatprep.subr.bf16.mxu0 %v449_v0  ;;  %365 = vmatprep.subr.bf16.mxu1 %v449_v0 }
  0x44   :  { %346 = vmatpush3.bf16.msra.mxu0 %v384_v10  ;;  %366 = vmatpush3.bf16.msra.mxu1 %v392_v19 }
  0x47   :  { %348 = vmatmul.mubr.bf16.vlgmr.msra.gmra.mrb[0].mxu0 %v51_v13 }
 0x11a   :  { %v157_v21 = vpop.f32.mrb[0].mxu0 }
 0x11b   :  { %v158_v22 = vadd.f32 %v295_v20, %v157_v21  ;;  %v349_v23 = vpop.f32.mrb[1].mxu0 }
 0x11c   :  { %v160_v24 = vpop.f32.mrb[2].mxu0 }
 0x11d   :  { %v166_v25 = vmul.f32 0.70710677, %v158_v22  ;;  %v161_v26 = vadd.f32 %v295_v20, %v160_v24  ;;  %v350_v27 = vpop.f32.mrb[3].mxu0  ;;  %v164_v32 = vmul.f32 0.5, %v158_v22 }
 0x11f   :  { %393 = verf.f32 %v166_v25  ;;  %v167_v28 = vmul.f32 0.70710677, %v161_v26  ;;  %v165_v33 = vmul.f32 0.5, %v161_v26 }
 0x121   :  { %395 = verf.f32 %v167_v28 }
 0x129   :  { %v394_v29 = vpop.eup %393 }
 0x12a   :  { %v170_v30 = vadd.f32 1.0, %v394_v29 }
 0x12b   :  { %v396_v31 = vpop.eup %395 }
 0x12c   :  { %v171_v34 = vadd.f32 1.0, %v396_v31  ;;  %v172_v35 = vmul.f32 %v170_v30, %v164_v32 }
 0x12e   :  { %v173_v36 = vmul.f32 %v171_v34, %v165_v33 }
 0x130   :  { %v174_v37 = vpack.c.bf16 %v173_v36, %v172_v35 }
 0x132   :  { %368 = vmatmul.mubr.bf16.vlgmr.msra.gmra.mrb[0].mxu1 %v174_v37 }
 0x205   :  { %v280_v39 = vpop.f32.mrb[0].mxu1 }
 0x206   :  { %v281_v40 = vadd.f32 %v304_v38, %v280_v39  ;;  %v369_v41 = vpop.f32.mrb[1].mxu1 }
 0x207   :  { %v283_v42 = vpop.f32.mrb[2].mxu1 }
 0x208   :  { %287 = vst [vmem:[%s528_s5] sm:$0xff] %v281_v40  ;;  %v284_v43 = vadd.f32 %v304_v38, %v283_v42  ;;  %v370_v44 = vpop.f32.mrb[3].mxu1 }
 0x20a   :  { %288 = vst [vmem:[%s528_s5 + $0x8] sm:$0xff] %v284_v43 }
 0x20b   :  { %293 = vsyncpa [#allocation3], 1 }
 0x20c   :  { %294 = vsyncpa [#allocation5], 1 }

</bundles_post_ra>
